<compile_context>
chip_gen: v7x
topology: tpu7x:2x2x1
jax: 0.10.0
libtpu: 0.0.40
codegen_flags: <defaults>
</compile_context>

<pallas_src>
import jax
import jax.numpy as jnp
import numpy as np
from jax.experimental import pallas as pl
from jax.experimental.pallas import tpu as pltpu


def pose_disc_kernel(x_ref, wconv_ref, bconv_ref, wfc_ref, bfc_ref,
                     s_ref, h_ref):
    # x_ref:     (TB, J*Cin)    activations, one row per batch element
    # wconv_ref: (J*Cin, J*C)   block-diagonal fused-conv weight (resident)
    # bconv_ref: (1, J*C)
    # wfc_ref:   (J*C, J)       block-diagonal per-joint fc weight (resident)
    # bfc_ref:   (1, J)
    # s_ref:     (TB, J)        scores, joints on lanes
    # h_ref:     (TB, J*C)      conv features, grouped per joint
    h = jnp.dot(x_ref[...], wconv_ref[...],
                preferred_element_type=jnp.float32) + bconv_ref[...]
    h_ref[...] = h
    s_ref[...] = jnp.dot(h, wfc_ref[...],
                         preferred_element_type=jnp.float32) + bfc_ref[...]


def prepare_params(params, compute_dtype=jnp.bfloat16):
    """One-time parameter preparation (hoisted out of the forward pass)."""
    w1, b1, w2, b2, wfc, bfc = params
    w1 = w1.astype(jnp.float32); b1 = b1.astype(jnp.float32)
    w2 = w2.astype(jnp.float32); b2 = b2.astype(jnp.float32)
    wfc = wfc.astype(jnp.float32); bfc = bfc.astype(jnp.float32)
    c_in = w1.shape[1]          # 9
    c = w2.shape[0]             # 32
    j = wfc.shape[0]            # 23

    # Fuse conv_0 / conv_1 (no nonlinearity between them):  h = x @ W12 + b12
    w12 = w1.T @ w2.T           # (Cin, C)
    b12 = b1 @ w2.T + b2        # (C,)

    # Block-diagonal expansion over the 23 joints.
    eye_j = jnp.eye(j, dtype=jnp.float32)
    # wconv_big[a*Cin + k, b*C + ch] = (a == b) * w12[k, ch]
    wconv_big = jnp.einsum('ab,kc->akbc', eye_j, w12).reshape(j * c_in, j * c)
    bconv_big = jnp.tile(b12, (j,)).reshape(1, j * c)
    # wfc_big[a*C + ch, b] = (a == b) * wfc[a, ch]
    wfc_big = jnp.einsum('ab,ac->acb', eye_j, wfc).reshape(j * c, j)
    bfc_row = bfc.reshape(1, j)

    return (wconv_big.astype(compute_dtype), bconv_big, wfc_big, bfc_row)


@jax.jit
def pose_discriminator_forward(inputs, prepared):
    """inputs: (B, 23, 9). Returns (scores (B, 23), internal (B, 32, 1, 23))."""
    wconv_big, bconv_big, wfc_big, bfc_row = prepared
    B, J, C_in = inputs.shape
    C = wconv_big.shape[1] // J
    compute_dtype = wconv_big.dtype

    # (B, J, Cin) -> (B, J*Cin) is a free row-major reshape; bf16 halves the
    # activation HBM traffic (accumulation stays f32 inside the MXU).
    x = inputs.reshape(B, J * C_in).astype(compute_dtype)

    # Row-block size: multiple of 8 sublanes, capped so double-buffered
    # x/h/score blocks stay a few MiB (well inside v7x's smaller VMEM).
    tb = min(512, ((B + 7) // 8) * 8)
    grid_b = pl.cdiv(B, tb)
    b_pad = grid_b * tb
    if b_pad != B:
        x = jnp.pad(x, ((0, b_pad - B), (0, 0)))

    scores_p, h_p = pl.pallas_call(
        pose_disc_kernel,
        out_shape=(jax.ShapeDtypeStruct((b_pad, J), jnp.float32),
                   jax.ShapeDtypeStruct((b_pad, J * C), jnp.float32)),
        grid_spec=pltpu.PrefetchScalarGridSpec(
            num_scalar_prefetch=0,
            grid=(grid_b,),
            in_specs=[
                pl.BlockSpec((tb, J * C_in), lambda i: (i, 0)),
                # Weights: constant index map -> fetched once, stay resident.
                pl.BlockSpec((J * C_in, J * C), lambda i: (0, 0)),
                pl.BlockSpec((1, J * C), lambda i: (0, 0)),
                pl.BlockSpec((J * C, J), lambda i: (0, 0)),
                pl.BlockSpec((1, J), lambda i: (0, 0)),
            ],
            out_specs=(
                pl.BlockSpec((tb, J), lambda i: (i, 0)),
                pl.BlockSpec((tb, J * C), lambda i: (i, 0)),
            ),
        ),
        compiler_params=pltpu.CompilerParams(
            dimension_semantics=("parallel",)),
    )(x, wconv_big, bconv_big, wfc_big, bfc_row)

    scores = scores_p[:B]
    # (B, J*C) -> (B, J, C) is free; the NCHW transpose to (B, C, 1, J) is the
    # only remaining layout pass and fuses with any consumer under jit.
    internal = h_p[:B].reshape(B, J, C).transpose(0, 2, 1)[:, :, None, :]
    return scores, internal


def _reference_forward(inputs, params):
    """Pure-JAX f32 reference matching the PyTorch module."""
    w1, b1, w2, b2, wfc, bfc = params
    h1 = jnp.einsum('bjk,ck->bjc', inputs, w1) + b1
    h2 = jnp.einsum('bjc,dc->bjd', h1, w2) + b2
    scores = jnp.einsum('bjc,jc->bj', h2, wfc) + bfc
    internal = h2.transpose(0, 2, 1)[:, :, None, :]
    return scores, internal


def _uniform(key, shape, fan_in):
    # PyTorch default Linear/Conv init range: U(-1/sqrt(fan_in), 1/sqrt(fan_in))
    bound = 1.0 / float(fan_in) ** 0.5
    return jax.random.uniform(key, shape, jnp.float32, -bound, bound)


if __name__ == "__main__":
    channels = [9, 32, 32, 1]   # channels[-1] must be 1
    B, J = 2, 23

    key = jax.random.PRNGKey(0)
    keys = jax.random.split(key, 7)
    w1 = _uniform(keys[0], (channels[1], channels[0]), channels[0])   # conv_0 1x1
    b1 = _uniform(keys[1], (channels[1],), channels[0])
    w2 = _uniform(keys[2], (channels[2], channels[1]), channels[1])   # conv_1 1x1
    b2 = _uniform(keys[3], (channels[2],), channels[1])
    wfc = _uniform(keys[4], (J, channels[2]), channels[2])            # 23 x Linear(32,1)
    bfc = _uniform(keys[5], (J,), channels[2])
    params = (w1, b1, w2, b2, wfc, bfc)

    inputs = jax.random.normal(keys[6], (B, J, channels[0]), jnp.float32)

    prepared = prepare_params(params)                     # one-time param prep
    scores, internal = pose_discriminator_forward(inputs, prepared)
    jax.block_until_ready((scores, internal))

    assert scores.shape == (B, J)                         # torch.cat(o, 1) -> (B, 23)
    assert internal.shape == (B, channels[2], 1, J)       # (B, 32, 1, 23)

    # Loose tolerance: conv fusion reassociates fp32 and x/W12 are bf16.
    ref_scores, ref_internal = _reference_forward(inputs, params)
    np.testing.assert_allclose(np.asarray(scores), np.asarray(ref_scores),
                               atol=2e-2, rtol=2e-2)
    np.testing.assert_allclose(np.asarray(internal), np.asarray(ref_internal),
                               atol=2e-2, rtol=2e-2)
    print("KERNEL_OK")
</pallas_src>

<mosaic_0001>
module attributes {stable_mosaic.version = 11 : i64} {
  func.func @pose_disc_kernel(%arg0: i32, %arg1: memref<8x207xbf16, #tpu.memory_space<vmem>>, %arg2: memref<207x736xbf16, #tpu.memory_space<vmem>>, %arg3: memref<1x736xf32, #tpu.memory_space<vmem>>, %arg4: memref<736x23xf32, #tpu.memory_space<vmem>>, %arg5: memref<1x23xf32, #tpu.memory_space<vmem>>, %arg6: memref<8x23xf32, #tpu.memory_space<vmem>>, %arg7: memref<8x736xf32, #tpu.memory_space<vmem>>) attributes {dimension_semantics = [#tpu.dimension_semantics<parallel>], iteration_bounds = array<i64: 1>, scalar_prefetch = 0 : i64, scratch_operands = 0 : i64, tpu.core_type = #tpu.core_type<tc>, window_params = [{transform_indices = @transform_0, window_bounds = array<i64: 8, 207>}, {pipeline_mode = #tpu.pipeline_mode<synchronous>, transform_indices = @transform_1, window_bounds = array<i64: 207, 736>}, {pipeline_mode = #tpu.pipeline_mode<synchronous>, transform_indices = @transform_2, window_bounds = array<i64: 1, 736>}, {pipeline_mode = #tpu.pipeline_mode<synchronous>, transform_indices = @transform_3, window_bounds = array<i64: 736, 23>}, {pipeline_mode = #tpu.pipeline_mode<synchronous>, transform_indices = @transform_4, window_bounds = array<i64: 1, 23>}, {transform_indices = @transform_5, window_bounds = array<i64: 8, 23>}, {transform_indices = @transform_6, window_bounds = array<i64: 8, 736>}]} {
    %c0 = arith.constant 0 : index
    %c0_0 = arith.constant 0 : index
    %0 = vector.load %arg1[%c0, %c0_0] : memref<8x207xbf16, #tpu.memory_space<vmem>>, vector<8x207xbf16>
    %c0_1 = arith.constant 0 : index
    %c0_2 = arith.constant 0 : index
    %1 = vector.load %arg2[%c0_1, %c0_2] : memref<207x736xbf16, #tpu.memory_space<vmem>>, vector<207x736xbf16>
    %cst = arith.constant dense<0.000000e+00> : vector<8x736xf32>
    %2 = tpu.matmul %0, %1, %cst {dimension_numbers = #tpu.dot_dimension_numbers<[1], [0], [0], [1], [0, 0, 1, 1], [], []>} : vector<8x207xbf16>, vector<207x736xbf16>, vector<8x736xf32> -> vector<8x736xf32>
    %c0_3 = arith.constant 0 : index
    %c0_4 = arith.constant 0 : index
    %3 = vector.load %arg3[%c0_3, %c0_4] : memref<1x736xf32, #tpu.memory_space<vmem>>, vector<1x736xf32>
    %4 = vector.broadcast %3 : vector<1x736xf32> to vector<8x736xf32>
    %5 = arith.addf %2, %4 : vector<8x736xf32>
    %c0_5 = arith.constant 0 : index
    %c0_6 = arith.constant 0 : index
    %6 = vector.load %arg7[%c0_5, %c0_6] : memref<8x736xf32, #tpu.memory_space<vmem>>, vector<8x736xf32>
    tpu.vector_store %arg7[%c0_5, %c0_6], %5 {strides = array<i32>} : memref<8x736xf32, #tpu.memory_space<vmem>>, vector<8x736xf32>,
    %c0_7 = arith.constant 0 : index
    %c0_8 = arith.constant 0 : index
    %7 = vector.load %arg4[%c0_7, %c0_8] : memref<736x23xf32, #tpu.memory_space<vmem>>, vector<736x23xf32>
    %cst_9 = arith.constant dense<0.000000e+00> : vector<8x23xf32>
    %8 = tpu.matmul %5, %7, %cst_9 {dimension_numbers = #tpu.dot_dimension_numbers<[1], [0], [0], [1], [0, 0, 1, 1], [], []>} : vector<8x736xf32>, vector<736x23xf32>, vector<8x23xf32> -> vector<8x23xf32>
    %c0_10 = arith.constant 0 : index
    %c0_11 = arith.constant 0 : index
    %9 = vector.load %arg5[%c0_10, %c0_11] : memref<1x23xf32, #tpu.memory_space<vmem>>, vector<1x23xf32>
    %10 = vector.broadcast %9 : vector<1x23xf32> to vector<8x23xf32>
    %11 = arith.addf %8, %10 : vector<8x23xf32>
    %c0_12 = arith.constant 0 : index
    %c0_13 = arith.constant 0 : index
    %12 = vector.load %arg6[%c0_12, %c0_13] : memref<8x23xf32, #tpu.memory_space<vmem>>, vector<8x23xf32>
    tpu.vector_store %arg6[%c0_12, %c0_13], %11 {strides = array<i32>} : memref<8x23xf32, #tpu.memory_space<vmem>>, vector<8x23xf32>,
    return
  }
  func.func @transform_0(%arg0: i32) -> (i32, i32) {
    %c0_i32 = arith.constant 0 : i32
    %c0_i32_0 = arith.constant 0 : i32
    return %arg0, %c0_i32 : i32, i32
  }
  func.func @transform_1(%arg0: i32) -> (i32, i32) {
    %c0_i32 = arith.constant 0 : i32
    %c0_i32_0 = arith.constant 0 : i32
    %c0_i32_1 = arith.constant 0 : i32
    return %c0_i32, %c0_i32_0 : i32, i32
  }
  func.func @transform_2(%arg0: i32) -> (i32, i32) {
    %c0_i32 = arith.constant 0 : i32
    %c0_i32_0 = arith.constant 0 : i32
    %c0_i32_1 = arith.constant 0 : i32
    return %c0_i32, %c0_i32_0 : i32, i32
  }
  func.func @transform_3(%arg0: i32) -> (i32, i32) {
    %c0_i32 = arith.constant 0 : i32
    %c0_i32_0 = arith.constant 0 : i32
    %c0_i32_1 = arith.constant 0 : i32
    return %c0_i32, %c0_i32_0 : i32, i32
  }
  func.func @transform_4(%arg0: i32) -> (i32, i32) {
    %c0_i32 = arith.constant 0 : i32
    %c0_i32_0 = arith.constant 0 : i32
    %c0_i32_1 = arith.constant 0 : i32
    return %c0_i32, %c0_i32_0 : i32, i32
  }
  func.func @transform_5(%arg0: i32) -> (i32, i32) {
    %c0_i32 = arith.constant 0 : i32
    %c0_i32_0 = arith.constant 0 : i32
    return %arg0, %c0_i32 : i32, i32
  }
  func.func @transform_6(%arg0: i32) -> (i32, i32) {
    %c0_i32 = arith.constant 0 : i32
    %c0_i32_0 = arith.constant 0 : i32
    return %arg0, %c0_i32 : i32, i32
  }
}

</mosaic_0001>

<bundles_post_ra>
// kernel: pose_discriminator_forward.1
= control target key start
LH: loop header
LB: loop body
LE: loop exit
PB: predicated region body
PF: predicated region fallthrough
CT: control target
= control target key end

     0   :  { %vm524_vm0 = vcmask 646144   ;;  %vm528_vm1 = vcmask 1046528   ;;  %vm529_vm2 = vcmask 1047552   ;;  %v1384_v40 = vmov 65535   ;;  %s2012_s1 = inlined_call_operand.vmem [shape: bf16[207,736], index: 1, kind: input, shape index: {}]   ;;  %s2013_s0 = inlined_call_operand.vmem [shape: bf16[8,207], index: 0, kind: input, shape index: {}]   ;;  %s2014_s3 = inlined_call_operand.vmem [shape: f32[736,23], index: 3, kind: input, shape index: {}]   ;;  %s2015_s2 = inlined_call_operand.vmem [shape: f32[1,736], index: 2, kind: input, shape index: {}]   ;;  %s2016_s6 = inlined_call_operand.vmem [shape: f32[8,736], index: 6, kind: output, shape index: {1}]   ;;  %s2017_s4 = inlined_call_operand.vmem [shape: f32[1,23], index: 4, kind: input, shape index: {}]   ;;  %s2018_s5 = inlined_call_operand.vmem [shape: f32[8,23], index: 5, kind: output, shape index: {0}]  }
   0x1   :  { %v1265_v0 = vld [vmem:[%s2012_s1 + $0x4] ss:$24 sps:$4 sm:$0xff]   ;;  %v1267_v1 = vld [vmem:[%s2012_s1] ss:$24 sps:$4 sm:$0xff]   ;;  %v1268_v2 = vld [vmem:[%s2012_s1 + $0x34] ss:$24 sps:$4 sm:$0xff]  }
   0x2   :  { %550 = vmatprep.subr.bf16.mxu0 %v1265_v0  ;;  %v1270_v3 = vld [vmem:[%s2012_s1 + $0x30] ss:$24 sps:$4 sm:$0xff]   ;;  %v1271_v4 = vld [vmem:[%s2012_s1 + $0x64] ss:$24 sps:$4 sm:$0xff]   ;;  %v1273_v5 = vld [vmem:[%s2012_s1 + $0x60] ss:$24 sps:$4 sm:$0xff]  }
   0x3   :  { %551 = vmatpush1.bf16.msra.mxu0 %v1267_v1  ;;  %v1274_v6 = vld [vmem:[%s2012_s1 + $0x94] ss:$24 sps:$4 sm:$0xff]   ;;  %v1276_v7 = vld [vmem:[%s2012_s1 + $0x90] ss:$24 sps:$4 sm:$0xff]   ;;  %v1277_v9 = vld [vmem:[%s2012_s1 + $0xc4] ss:$24 sps:$4 sm:$0xff]  }
   0x4   :  { %552 = vmatprep.subr.bf16.mxu0 %v1268_v2  ;;  %v1289_v8 = vld [vmem:[%s2012_s1 + $0xc] ss:$24 sps:$4 sm:$0xff]   ;;  %v1293_v10 = vld [vmem:[%s2012_s1 + $0x8] ss:$24 sps:$4 sm:$0xff]   ;;  %v1295_v11 = vld [vmem:[%s2012_s1 + $0x3c] ss:$24 sps:$4 sm:$0xff]  }
   0x5   :  { %591 = vmatprep.subr.bf16.mxu1 %v1289_v8  ;;  %v1279_v12 = vld [vmem:[%s2012_s1 + $0xc0] ss:$24 sps:$4 sm:$0xff]   ;;  %v1280_v13 = vld [vmem:[%s2012_s1 + $0xf4] ss:$24 sps:$4 sm:$0xff]   ;;  %v1282_v16 = vld [vmem:[%s2012_s1 + $0xf0] ss:$24 sps:$4 sm:$0xff]  }
   0x6   :  { %592 = vmatpush1.bf16.msra.mxu1 %v1293_v10  ;;  %v1299_v14 = vld [vmem:[%s2012_s1 + $0x38] ss:$24 sps:$4 sm:$0xff]   ;;  %v1301_v15 = vld [vmem:[%s2012_s1 + $0x6c] ss:$24 sps:$4 sm:$0xff]   ;;  %v1305_v17 = vld [vmem:[%s2012_s1 + $0x68] ss:$24 sps:$4 sm:$0xff]  }
   0x7   :  { %553 = vmatpush1.bf16.msra.mxu0 %v1270_v3  ;;  %593 = vmatprep.subr.bf16.mxu1 %v1295_v11  ;;  %v1307_v18 = vld [vmem:[%s2012_s1 + $0x9c] ss:$24 sps:$4 sm:$0xff]   ;;  %v1311_v20 = vld [vmem:[%s2012_s1 + $0x98] ss:$24 sps:$4 sm:$0xff]   ;;  %v1313_v23 = vld [vmem:[%s2012_s1 + $0xcc] ss:$24 sps:$4 sm:$0xff]  }
   0x8   :  { %554 = vmatprep.subr.bf16.mxu0 %v1271_v4  ;;  %v1283_v19 = vld [vmem:[%s2012_s1 + $0x124] ss:$24 sps:$4 sm:$0xff]   ;;  %v1285_v21 = vld [vmem:[%s2012_s1 + $0x120] ss:$24 sps:$4 sm:$0xff]   ;;  %v1286_v22 = vld [vmem:[%s2012_s1 + $0x154] ss:$24 sps:$4 sm:$0xff]  }
   0x9   :  { %v23_v24 = vld [vmem:[%s2013_s0] sm:$0xff]  ;;  %v1288_v26 = vld [vmem:[%s2012_s1 + $0x150] ss:$24 sps:$4 sm:$0xff]   ;;  %v1320_v28 = vld [vmem:[%s2012_s1 + $0xfc] ss:$24 sps:$4 sm:$0xff]   ;;  %v530_v41 = vsel %vm528_vm1, 4294967295, %v1384_v40 }
   0xa   :  { %594 = vmatpush1.bf16.msra.mxu1 %v1299_v14  ;;  %v1496_v25 = vcombine.high %v23_v24, %v23_v24  ;;  %v1317_v27 = vld [vmem:[%s2012_s1 + $0xc8] ss:$24 sps:$4 sm:$0xff]   ;;  %v1291_v29 = vld [vmem:[%s2012_s1 + $0x184] ss:$24 sps:$4 sm:$0xff]   ;;  %v1323_v31 = vld [vmem:[%s2012_s1 + $0xf8] ss:$24 sps:$4 sm:$0xff]   ;;  %v1581_v56 = vcombine.low %v23_v24, %v23_v24 }
   0xb   :  { %555 = vmatpush1.bf16.msra.mxu0 %v1273_v5  ;;  %595 = vmatprep.subr.bf16.mxu1 %v1301_v15  ;;  %v1294_v30 = vld [vmem:[%s2012_s1 + $0x180] ss:$24 sps:$4 sm:$0xff]   ;;  %v1327_v32 = vld [vmem:[%s2012_s1 + $0x12c] ss:$24 sps:$4 sm:$0xff]   ;;  %v1300_v34 = vld [vmem:[%s2012_s1 + $0x1b0] ss:$24 sps:$4 sm:$0xff]  }
   0xc   :  { %556 = vmatprep.subr.bf16.mxu0 %v1274_v6  ;;  %1082 = vmatprep.mubr.msk.bf16.mxu0 %vm524_vm0, %v1496_v25  ;;  %v1297_v33 = vld [vmem:[%s2012_s1 + $0x1b4] ss:$24 sps:$4 sm:$0xff]   ;;  %v1329_v35 = vld [vmem:[%s2012_s1 + $0x128] ss:$24 sps:$4 sm:$0xff]   ;;  %v1303_v37 = vld [vmem:[%s2012_s1 + $0x1e4] ss:$24 sps:$4 sm:$0xff]  }
   0xd   :  { %1083 = vmatprep.mubr.msk.bf16.mxu1 %vm524_vm0, %v1496_v25  ;;  %v1333_v36 = vld [vmem:[%s2012_s1 + $0x15c] ss:$24 sps:$4 sm:$0xff]   ;;  %v1306_v38 = vld [vmem:[%s2012_s1 + $0x1e0] ss:$24 sps:$4 sm:$0xff]   ;;  %v1339_v43 = vld [vmem:[%s2012_s1 + $0x18c] ss:$24 sps:$4 sm:$0xff]  }
   0xe   :  { %596 = vmatpush1.bf16.msra.mxu1 %v1305_v17  ;;  %v1309_v39 = vld [vmem:[%s2012_s1 + $0x214] ss:$24 sps:$4 sm:$0xff]   ;;  %v1335_v42 = vld [vmem:[%s2012_s1 + $0x158] ss:$24 sps:$4 sm:$0xff]   ;;  %v1315_v44 = vld [vmem:[%s2012_s1 + $0x244] ss:$24 sps:$4 sm:$0xff]  }
   0xf   :  { %557 = vmatpush1.bf16.msra.mxu0 %v1276_v7  ;;  %597 = vmatprep.subr.bf16.mxu1 %v1307_v18  ;;  %v1312_v45 = vld [vmem:[%s2012_s1 + $0x210] ss:$24 sps:$4 sm:$0xff]   ;;  %v1556_v46 = vsel %vm529_vm2, %v530_v41, 0  ;;  %v1318_v47 = vld [vmem:[%s2012_s1 + $0x240] ss:$24 sps:$4 sm:$0xff]   ;;  %vm678_vm3 = vcmask 785408  }
  0x10   :  { %558 = vmatprep.subr.bf16.mxu0 %v1277_v9  ;;  %v1341_v48 = vld [vmem:[%s2012_s1 + $0x188] ss:$24 sps:$4 sm:$0xff]   ;;  %v1345_v49 = vld [vmem:[%s2012_s1 + $0x1bc] ss:$24 sps:$4 sm:$0xff]   ;;  %v536_v50 = vand.u32 %v1315_v44, %v1556_v46  ;;  %v1347_v51 = vld [vmem:[%s2012_s1 + $0x1b8] ss:$24 sps:$4 sm:$0xff]   ;;  %v533_v52 = vand.u32 %v1318_v47, %v1556_v46 }
  0x11   :  { %v1351_v53 = vld [vmem:[%s2012_s1 + $0x1ec] ss:$24 sps:$4 sm:$0xff]   ;;  %v1324_v55 = vld [vmem:[%s2012_s1 + $0x10] ss:$24 sps:$4 sm:$0xff]   ;;  %v1357_v58 = vld [vmem:[%s2012_s1 + $0x21c] ss:$24 sps:$4 sm:$0xff]  }
  0x12   :  { %598 = vmatpush1.bf16.msra.mxu1 %v1311_v20  ;;  %v1326_v54 = vld [vmem:[%s2012_s1 + $0x14] ss:$24 sps:$4 sm:$0xff]   ;;  %v1353_v57 = vld [vmem:[%s2012_s1 + $0x1e8] ss:$24 sps:$4 sm:$0xff]   ;;  %v1332_v60 = vld [vmem:[%s2012_s1 + $0x44] ss:$24 sps:$4 sm:$0xff]  }
  0x13   :  { %559 = vmatpush1.bf16.msra.mxu0 %v1279_v12  ;;  %599 = vmatprep.subr.bf16.mxu1 %v1313_v23  ;;  %v1363_v59 = vld [vmem:[%s2012_s1 + $0x24c] ss:$24 sps:$4 sm:$0xff]   ;;  %v1359_v61 = vld [vmem:[%s2012_s1 + $0x218] ss:$24 sps:$4 sm:$0xff]   ;;  %v1365_v62 = vld [vmem:[%s2012_s1 + $0x248] ss:$24 sps:$4 sm:$0xff]  }
  0x14   :  { %560 = vmatprep.subr.bf16.mxu0 %v1280_v13  ;;  %v1330_v63 = vld [vmem:[%s2012_s1 + $0x40] ss:$24 sps:$4 sm:$0xff]   ;;  %v542_v0 = vand.u32 %v1363_v59, %v1556_v46  ;;  %v1338_v1 = vld [vmem:[%s2012_s1 + $0x74] ss:$24 sps:$4 sm:$0xff]   ;;  %v539_v4 = vand.u32 %v1365_v62, %v1556_v46  ;;  %v1336_v5 = vld [vmem:[%s2012_s1 + $0x70] ss:$24 sps:$4 sm:$0xff]  }
  0x15   :  { %v696_v2 = vld [vmem:[%s2014_s3 + $0x80] sm:$0xff]  ;;  %v697_v3 = vld [vmem:[%s2014_s3 + $0x88] sm:$0xff]  ;;  %v698_v10 = vld [vmem:[%s2014_s3 + $0x90] sm:$0xff]  ;;  %vm992_vm4 = vcmask 187392  }
  0x16   :  { %600 = vmatpush1.bf16.msra.mxu1 %v1317_v27  ;;  %v1157_v6 = vpack.c.bf16 %v697_v3, %v696_v2  ;;  %v680_v7 = vld [vmem:[%s2014_s3] sm:$0xff]  ;;  %v681_v8 = vld [vmem:[%s2014_s3 + $0x8] sm:$0xff]  ;;  %v699_v11 = vld [vmem:[%s2014_s3 + $0x98] sm:$0xff] }
  0x17   :  { %561 = vmatpush1.bf16.msra.mxu0 %v1282_v16  ;;  %601 = vmatprep.subr.bf16.mxu1 %v1320_v28  ;;  %v1344_v9 = vld [vmem:[%s2012_s1 + $0xa4] ss:$24 sps:$4 sm:$0xff]   ;;  %v1159_v12 = vpack.c.bf16 %v681_v8, %v680_v7  ;;  %v1342_v13 = vld [vmem:[%s2012_s1 + $0xa0] ss:$24 sps:$4 sm:$0xff]   ;;  %v1161_v14 = vpack.c.bf16 %v699_v11, %v698_v10  ;;  %v682_v15 = vld [vmem:[%s2014_s3 + $0x10] sm:$0xff] }
  0x18   :  { %562 = vmatprep.subr.bf16.mxu0 %v1283_v19  ;;  %v683_v16 = vld [vmem:[%s2014_s3 + $0x18] sm:$0xff]  ;;  %v1350_v17 = vld [vmem:[%s2012_s1 + $0xd4] ss:$24 sps:$4 sm:$0xff]   ;;  %v700_v18 = vld [vmem:[%s2014_s3 + $0xa0] sm:$0xff] }
  0x19   :  { %v701_v19 = vld [vmem:[%s2014_s3 + $0xa8] sm:$0xff]  ;;  %v1163_v20 = vpack.c.bf16 %v683_v16, %v682_v15  ;;  %v684_v23 = vld [vmem:[%s2014_s3 + $0x20] sm:$0xff]  ;;  %v703_v27 = vld [vmem:[%s2014_s3 + $0xb8] sm:$0xff] }
  0x1a   :  { %602 = vmatpush1.bf16.msra.mxu1 %v1323_v31  ;;  %v685_v24 = vld [vmem:[%s2014_s3 + $0x28] sm:$0xff]  ;;  %v686_v31 = vld [vmem:[%s2014_s3 + $0x30] sm:$0xff]  ;;  %v1368_v41 = vld [vmem:[%s2012_s1 + $0x164] ss:$24 sps:$4 sm:$0xff]  }
  0x1b   :  { %563 = vmatpush1.bf16.msra.mxu0 %v1285_v21  ;;  %603 = vmatprep.subr.bf16.mxu1 %v1327_v32  ;;  %v1348_v21 = vld [vmem:[%s2012_s1 + $0xd0] ss:$24 sps:$4 sm:$0xff]   ;;  %v1167_v28 = vpack.c.bf16 %v685_v24, %v684_v23  ;;  %v687_v32 = vld [vmem:[%s2014_s3 + $0x38] sm:$0xff]  ;;  %v1377_v62 = vld [vmem:[%s2012_s1 + $0x1f4] ss:$24 sps:$4 sm:$0xff]  }
  0x1c   :  { %564 = vmatprep.subr.bf16.mxu0 %v1286_v22  ;;  %v1165_v22 = vpack.c.bf16 %v701_v19, %v700_v18  ;;  %v689_v40 = vld [vmem:[%s2014_s3 + $0x48] sm:$0xff]  ;;  %v1374_v59 = vld [vmem:[%s2012_s1 + $0x1c4] ss:$24 sps:$4 sm:$0xff]   ;;  %v1378_v2 = vld [vmem:[%s2012_s1 + $0x220] ss:$24 sps:$4 sm:$0xff]  }
  0x1d   :  { %v1381_v3 = vld [vmem:[%s2012_s1 + $0x250] ss:$24 sps:$4 sm:$0xff]   ;;  %v711_v7 = vld [vmem:[%s2014_s3 + $0xf8] sm:$0xff] }
  0x1e   :  { %604 = vmatpush1.bf16.msra.mxu1 %v1329_v35  ;;  %v705_v35 = vld [vmem:[%s2014_s3 + $0xc8] sm:$0xff]  ;;  %v747_v18 = vld [vmem:[%s2014_s3 + $0x218] sm:$0xff]  ;;  %v750_v23 = vld [vmem:[%s2014_s3 + $0x230] sm:$0xff] }
  0x1f   :  { %565 = vmatpush1.bf16.msra.mxu0 %v1288_v26  ;;  %605 = vmatprep.subr.bf16.mxu1 %v1333_v36  ;;  %v702_v26 = vld [vmem:[%s2014_s3 + $0xb0] sm:$0xff]  ;;  %v1171_v36 = vpack.c.bf16 %v687_v32, %v686_v31  ;;  %v745_v11 = vld [vmem:[%s2014_s3 + $0x208] sm:$0xff]  ;;  %v751_v24 = vld [vmem:[%s2014_s3 + $0x238] sm:$0xff] }
  0x20   :  { %566 = vmatprep.subr.bf16.mxu0 %v1291_v29  ;;  %v1354_v29 = vld [vmem:[%s2012_s1 + $0x100] ss:$24 sps:$4 sm:$0xff]   ;;  %v729_v15 = vld [vmem:[%s2014_s3 + $0x188] sm:$0xff] }
  0x21   :  { %v756_v32 = vld [vmem:[%s2014_s3 + $0x260] sm:$0xff] }
  0x22   :  { %606 = vmatpush1.bf16.msra.mxu1 %v1335_v42  ;;  %v706_v42 = vld [vmem:[%s2014_s3 + $0xd0] sm:$0xff] }
  0x23   :  { %567 = vmatpush1.bf16.msra.mxu0 %v1294_v30  ;;  %607 = vmatprep.subr.bf16.mxu1 %v1339_v43  ;;  %v1169_v30 = vpack.c.bf16 %v703_v27, %v702_v26  ;;  %v707_v43 = vld [vmem:[%s2014_s3 + $0xd8] sm:$0xff]  ;;  %v752_v26 = vld [vmem:[%s2014_s3 + $0x240] sm:$0xff]  ;;  %v753_v27 = vld [vmem:[%s2014_s3 + $0x248] sm:$0xff] }
  0x24   :  { %568 = vmatprep.subr.bf16.mxu0 %v1297_v33  ;;  %v1362_v33 = vld [vmem:[%s2012_s1 + $0x134] ss:$24 sps:$4 sm:$0xff]   ;;  %v1177_v47 = vpack.c.bf16 %v707_v43, %v706_v42  ;;  %v763_v42 = vld [vmem:[%s2014_s3 + $0x298] sm:$0xff] }
  0x26   :  { %608 = vmatpush1.bf16.msra.mxu1 %v1341_v48  ;;  %v690_v48 = vld [vmem:[%s2014_s3 + $0x50] sm:$0xff] }
  0x27   :  { %569 = vmatpush1.bf16.msra.mxu0 %v1300_v34  ;;  %609 = vmatprep.subr.bf16.mxu1 %v1345_v49  ;;  %v704_v34 = vld [vmem:[%s2014_s3 + $0xc0] sm:$0xff]  ;;  %v691_v49 = vld [vmem:[%s2014_s3 + $0x58] sm:$0xff] }
  0x28   :  { %570 = vmatprep.subr.bf16.mxu0 %v1303_v37  ;;  %v1360_v37 = vld [vmem:[%s2012_s1 + $0x130] ss:$24 sps:$4 sm:$0xff]  }
  0x2a   :  { %610 = vmatpush1.bf16.msra.mxu1 %v1347_v51  ;;  %v708_v51 = vld [vmem:[%s2014_s3 + $0xe0] sm:$0xff] }
  0x2b   :  { %571 = vmatpush1.bf16.msra.mxu0 %v1306_v38  ;;  %611 = vmatprep.subr.bf16.mxu1 %v1351_v53  ;;  %v1173_v38 = vpack.c.bf16 %v705_v35, %v704_v34  ;;  %v1179_v53 = vpack.c.bf16 %v691_v49, %v690_v48  ;;  %v758_v35 = vld [vmem:[%s2014_s3 + $0x270] sm:$0xff]  ;;  %v767_v49 = vld [vmem:[%s2014_s3 + $0x2b8] sm:$0xff] }
  0x2c   :  { %572 = vmatprep.subr.bf16.mxu0 %v1309_v39  ;;  %v688_v39 = vld [vmem:[%s2014_s3 + $0x40] sm:$0xff]  ;;  %v766_v48 = vld [vmem:[%s2014_s3 + $0x2b0] sm:$0xff] }
  0x2d   :  { %v1175_v44 = vpack.c.bf16 %v689_v40, %v688_v39  ;;  %v761_v39 = vld [vmem:[%s2014_s3 + $0x288] sm:$0xff] }
  0x2e   :  { %612 = vmatpush1.bf16.msra.mxu1 %v1353_v57  ;;  %v692_v57 = vld [vmem:[%s2014_s3 + $0x60] sm:$0xff] }
  0x2f   :  { %573 = vmatpush1.bf16.msra.mxu0 %v1312_v45  ;;  %613 = vmatprep.subr.bf16.mxu1 %v1357_v58  ;;  %v1366_v45 = vld [vmem:[%s2012_s1 + $0x160] ss:$24 sps:$4 sm:$0xff]   ;;  %v693_v58 = vld [vmem:[%s2014_s3 + $0x68] sm:$0xff] }
  0x30   :  { %574 = vmatprep.subr.bf16.mxu0 %v536_v50  ;;  %v1371_v50 = vld [vmem:[%s2012_s1 + $0x194] ss:$24 sps:$4 sm:$0xff]  }
  0x32   :  { %614 = vmatpush1.bf16.msra.mxu1 %v1359_v61  ;;  %v1372_v61 = vld [vmem:[%s2012_s1 + $0x1c0] ss:$24 sps:$4 sm:$0xff]  }
  0x33   :  { %575 = vmatpush1.bf16.msra.mxu0 %v533_v52  ;;  %615 = vmatprep.subr.bf16.mxu1 %v542_v0  ;;  %v709_v52 = vld [vmem:[%s2014_s3 + $0xe8] sm:$0xff]  ;;  %v1380_v0 = vld [vmem:[%s2012_s1 + $0x224] ss:$24 sps:$4 sm:$0xff]  }
  0x34   :  { %632 = vmatprep.subr.bf16.mxu0 %v1326_v54  ;;  %v1369_v54 = vld [vmem:[%s2012_s1 + $0x190] ss:$24 sps:$4 sm:$0xff]  }
  0x36   :  { %583 = vmatmul.mubr.bf16.vlgmr.msra.gmra.mrb[0].mxu0 %v1581_v56  ;;  %616 = vmatpush1.bf16.msra.mxu1 %v539_v4 }
  0x37   :  { %633 = vmatpush1.bf16.msra.mxu0 %v1324_v55  ;;  %1084 = vmatprep.mubr.msk.bf16.mxu0 %vm524_vm0, %v1496_v25  ;;  %v1356_v25 = vld [vmem:[%s2012_s1 + $0x104] ss:$24 sps:$4 sm:$0xff]   ;;  %v1181_v55 = vpack.c.bf16 %v709_v52, %v708_v51  ;;  %v769_v52 = vld [vmem:[%s2014_s3 + $0x2c8] sm:$0xff] }
  0x38   :  { %634 = vmatprep.subr.bf16.mxu0 %v1332_v60  ;;  %1158 = vmatprep.subr.bf16.mxu1 %v1157_v6  ;;  %v1183_v60 = vpack.c.bf16 %v693_v58, %v692_v57  ;;  %v710_v6 = vld [vmem:[%s2014_s3 + $0xf0] sm:$0xff]  ;;  %v768_v51 = vld [vmem:[%s2014_s3 + $0x2c0] sm:$0xff]  ;;  %v104_v58 = vlaneseq }
  0x39   :  { %624 = vmatmul.mubr.bf16.vlgmr.msra.gmra.mrb[0].mxu1 %v1581_v56  ;;  %v1185_v8 = vpack.c.bf16 %v711_v7, %v710_v6 }
  0x3a   :  { %1160 = vmatpush3.bf16.msra.mxu1 %v1159_v12 }
  0x3b   :  { %635 = vmatpush1.bf16.msra.mxu0 %v1330_v63  ;;  %1162 = vmatprep.subr.bf16.mxu1 %v1161_v14  ;;  %v1375_v63 = vld [vmem:[%s2012_s1 + $0x1f0] ss:$24 sps:$4 sm:$0xff]   ;;  %v728_v14 = vld [vmem:[%s2014_s3 + $0x180] sm:$0xff] }
  0x3c   :  { %636 = vmatprep.subr.bf16.mxu0 %v1338_v1  ;;  %v1383_v1 = vld [vmem:[%s2012_s1 + $0x254] ss:$24 sps:$4 sm:$0xff]   ;;  %v1189_v16 = vpack.c.bf16 %v729_v15, %v728_v14 }
  0x3d   :  { %v548_v4 = vand.u32 %v1383_v1, %v1556_v46  ;;  %v712_v1 = vld [vmem:[%s2014_s3 + $0x100] sm:$0xff]  ;;  %v733_v14 = vld [vmem:[%s2014_s3 + $0x1a8] sm:$0xff] }
  0x3e   :  { %1164 = vmatpush3.bf16.msra.mxu1 %v1163_v20  ;;  %v748_v20 = vld [vmem:[%s2014_s3 + $0x220] sm:$0xff] }
  0x3f   :  { %637 = vmatpush1.bf16.msra.mxu0 %v1336_v5  ;;  %1166 = vmatprep.subr.bf16.mxu1 %v1165_v22  ;;  %v545_v5 = vand.u32 %v1381_v3, %v1556_v46  ;;  %v695_v46 = vld [vmem:[%s2014_s3 + $0x78] sm:$0xff] }
  0x40   :  { %638 = vmatprep.subr.bf16.mxu0 %v1344_v9  ;;  %v694_v9 = vld [vmem:[%s2014_s3 + $0x70] sm:$0xff] }
  0x41   :  { %v1187_v10 = vpack.c.bf16 %v695_v46, %v694_v9 }
  0x42   :  { %1168 = vmatpush3.bf16.msra.mxu1 %v1167_v28  ;;  %v1234_v28 = vpack.c.bf16 %v753_v27, %v752_v26  ;;  %v718_v27 = vld [vmem:[%s2014_s3 + $0x130] sm:$0xff] }
  0x43   :  { %639 = vmatpush1.bf16.msra.mxu0 %v1342_v13  ;;  %1170 = vmatprep.subr.bf16.mxu1 %v1169_v30  ;;  %v1385_v13 = vmov 0.0|0.0   ;;  %v755_v30 = vld [vmem:[%s2014_s3 + $0x258] sm:$0xff] }
  0x44   :  { %640 = vmatprep.subr.bf16.mxu0 %v1350_v17  ;;  %v746_v17 = vld [vmem:[%s2014_s3 + $0x210] sm:$0xff] }
  0x45   :  { %v1225_v19 = vpack.c.bf16 %v747_v18, %v746_v17 }
  0x46   :  { %1172 = vmatpush3.bf16.msra.mxu1 %v1171_v36  ;;  %v759_v36 = vld [vmem:[%s2014_s3 + $0x278] sm:$0xff] }
  0x47   :  { %641 = vmatpush1.bf16.msra.mxu0 %v1348_v21  ;;  %1174 = vmatprep.subr.bf16.mxu1 %v1173_v38  ;;  %v749_v21 = vld [vmem:[%s2014_s3 + $0x228] sm:$0xff]  ;;  %v760_v38 = vld [vmem:[%s2014_s3 + $0x280] sm:$0xff] }
  0x48   :  { %642 = vmatprep.subr.bf16.mxu0 %v1356_v25  ;;  %v1228_v22 = vpack.c.bf16 %v749_v21, %v748_v20  ;;  %v1231_v25 = vpack.c.bf16 %v751_v24, %v750_v23  ;;  %v1246_v40 = vpack.c.bf16 %v761_v39, %v760_v38  ;;  %v717_v20 = vld [vmem:[%s2014_s3 + $0x128] sm:$0xff]  ;;  %v734_v21 = vld [vmem:[%s2014_s3 + $0x1b0] sm:$0xff]  ;;  %v720_v39 = vld [vmem:[%s2014_s3 + $0x140] sm:$0xff] }
  0x4a   :  { %1176 = vmatpush3.bf16.msra.mxu1 %v1175_v44  ;;  %v764_v44 = vld [vmem:[%s2014_s3 + $0x2a0] sm:$0xff] }
  0x4b   :  { %643 = vmatpush1.bf16.msra.mxu0 %v1354_v29  ;;  %1178 = vmatprep.subr.bf16.mxu1 %v1177_v47  ;;  %v754_v29 = vld [vmem:[%s2014_s3 + $0x250] sm:$0xff] }
  0x4c   :  { %644 = vmatprep.subr.bf16.mxu0 %v1362_v33  ;;  %v1237_v31 = vpack.c.bf16 %v755_v30, %v754_v29  ;;  %v757_v33 = vld [vmem:[%s2014_s3 + $0x268] sm:$0xff]  ;;  %v736_v30 = vld [vmem:[%s2014_s3 + $0x1c0] sm:$0xff] }
  0x4d   :  { %v1240_v34 = vpack.c.bf16 %v757_v33, %v756_v32 }
  0x4e   :  { %1180 = vmatpush3.bf16.msra.mxu1 %v1179_v53  ;;  %v1258_v53 = vpack.c.bf16 %v769_v52, %v768_v51  ;;  %v724_v52 = vld [vmem:[%s2014_s3 + $0x160] sm:$0xff] }
  0x4f   :  { %645 = vmatpush1.bf16.msra.mxu0 %v1360_v37  ;;  %1182 = vmatprep.subr.bf16.mxu1 %v1181_v55  ;;  %v1243_v37 = vpack.c.bf16 %v759_v36, %v758_v35  ;;  %v771_v55 = vld [vmem:[%s2014_s3 + $0x2d8] sm:$0xff] }
  0x50   :  { %646 = vmatprep.subr.bf16.mxu0 %v1368_v41  ;;  %v762_v41 = vld [vmem:[%s2014_s3 + $0x290] sm:$0xff] }
  0x51   :  { %v1249_v43 = vpack.c.bf16 %v763_v42, %v762_v41  ;;  %v738_v41 = vld [vmem:[%s2014_s3 + $0x1d0] sm:$0xff]  ;;  %v739_v42 = vld [vmem:[%s2014_s3 + $0x1d8] sm:$0xff] }
  0x52   :  { %1184 = vmatpush3.bf16.msra.mxu1 %v1183_v60 }
  0x53   :  { %647 = vmatpush1.bf16.msra.mxu0 %v1366_v45  ;;  %1186 = vmatprep.subr.bf16.mxu1 %v1185_v8  ;;  %v765_v45 = vld [vmem:[%s2014_s3 + $0x2a8] sm:$0xff] }
  0x54   :  { %648 = vmatprep.subr.bf16.mxu0 %v1371_v50  ;;  %v1252_v47 = vpack.c.bf16 %v765_v45, %v764_v44  ;;  %v1255_v50 = vpack.c.bf16 %v767_v49, %v766_v48  ;;  %v1209_v44 = vpack.c.bf16 %v739_v42, %v738_v41  ;;  %v722_v45 = vld [vmem:[%s2014_s3 + $0x150] sm:$0xff]  ;;  %v740_v48 = vld [vmem:[%s2014_s3 + $0x1e0] sm:$0xff]  ;;  %v741_v49 = vld [vmem:[%s2014_s3 + $0x1e8] sm:$0xff] }
  0x55   :  { %v1213_v51 = vpack.c.bf16 %v741_v49, %v740_v48 }
  0x56   :  { %1188 = vmatpush3.bf16.msra.mxu1 %v1187_v10 }
  0x57   :  { %649 = vmatpush1.bf16.msra.mxu0 %v1369_v54  ;;  %1190 = vmatprep.subr.bf16.mxu1 %v1189_v16  ;;  %v770_v54 = vld [vmem:[%s2014_s3 + $0x2d0] sm:$0xff] }
  0x58   :  { %650 = vmatprep.subr.bf16.mxu0 %v1374_v59  ;;  %v1261_v57 = vpack.c.bf16 %v771_v55, %v770_v54  ;;  %v1879_v59 = vshrl.u32 %v104_v58, 7  ;;  %v742_v54 = vld [vmem:[%s2014_s3 + $0x1f0] sm:$0xff]  ;;  %v743_v55 = vld [vmem:[%s2014_s3 + $0x1f8] sm:$0xff] }
  0x59   :  { %v1217_v58 = vpack.c.bf16 %v743_v55, %v742_v54 }
  0x5a   :  { %v106_v60 = vsub.s32 0, %v1879_v59  ;;  %v114_v15 = vsub.s32 2, %v1879_v59  ;;  %v118_v16 = vsub.s32 3, %v1879_v59 }
  0x5b   :  { %651 = vmatpush1.bf16.msra.mxu0 %v1372_v61  ;;  %v1885_v61 = vld [vmem:[%s2015_s2] sm:$0x3f] }
  0x5c   :  { %652 = vmatprep.subr.bf16.mxu0 %v1377_v62  ;;  %v110_v62 = vsub.s32 1, %v1879_v59  ;;  %v115_v23 = vrot.slane %v1885_v61, %v114_v15  ;;  %v119_v24 = vrot.slane %v1885_v61, %v118_v16 }
  0x5f   :  { %653 = vmatpush1.bf16.msra.mxu0 %v1375_v63  ;;  %v107_v63 = vrot.slane %v1885_v61, %v106_v60  ;;  %v726_v60 = vld [vmem:[%s2014_s3 + $0x170] sm:$0xff] }
  0x60   :  { %654 = vmatprep.subr.bf16.mxu0 %v1380_v0  ;;  %v111_v0 = vrot.slane %v1885_v61, %v110_v62  ;;  %v727_v62 = vld [vmem:[%s2014_s3 + $0x178] sm:$0xff] }
  0x63   :  { %655 = vmatpush1.bf16.msra.mxu0 %v1378_v2  ;;  %v713_v2 = vld [vmem:[%s2014_s3 + $0x108] sm:$0xff] }
  0x64   :  { %656 = vmatprep.subr.bf16.mxu0 %v548_v4  ;;  %v730_v4 = vld [vmem:[%s2014_s3 + $0x190] sm:$0xff]  ;;  %v1191_v46 = vpack.c.bf16 %v713_v2, %v712_v1  ;;  %v126_v1 = vsub.s32 5, %v1879_v59 }
  0x67   :  { %657 = vmatpush1.bf16.msra.mxu0 %v545_v5  ;;  %v731_v5 = vld [vmem:[%s2014_s3 + $0x198] sm:$0xff] }
  0x68   :  { %1221 = vmatprep.subr.bf16.mxu0 %v1385_v13 }
  0x6a   :  { %665 = vmatmul.mubr.bf16.vlgmr.msra.gmra.mrb[4].mxu0 %v1581_v56  ;;  %v744_v56 = vld [vmem:[%s2014_s3 + $0x200] sm:$0xff] }
  0x6b   :  { %v1222_v12 = vpack.c.bf16 %v745_v11, %v744_v56  ;;  %v1193_v56 = vpack.c.bf16 %v731_v5, %v730_v4  ;;  %v714_v11 = vld [vmem:[%s2014_s3 + $0x110] sm:$0xff] }
  0x6d   :  { %1223 = vmatpush1.bf16.msra.mxu0 %v1222_v12  ;;  %v715_v12 = vld [vmem:[%s2014_s3 + $0x118] sm:$0xff] }
  0x6e   :  { %1224 = vmatprep.subr.bf16.mxu0 %v1385_v13  ;;  %v1195_v17 = vpack.c.bf16 %v715_v12, %v714_v11 }
  0x71   :  { %1226 = vmatpush1.bf16.msra.mxu0 %v1225_v19  ;;  %v716_v19 = vld [vmem:[%s2014_s3 + $0x120] sm:$0xff] }
  0x72   :  { %1227 = vmatprep.subr.bf16.mxu0 %v1385_v13 }
  0x75   :  { %1229 = vmatpush1.bf16.msra.mxu0 %v1228_v22  ;;  %v735_v22 = vld [vmem:[%s2014_s3 + $0x1b8] sm:$0xff] }
  0x76   :  { %1230 = vmatprep.subr.bf16.mxu0 %v1385_v13  ;;  %v1201_v26 = vpack.c.bf16 %v735_v22, %v734_v21 }
  0x79   :  { %1232 = vmatpush1.bf16.msra.mxu0 %v1231_v25  ;;  %v1199_v25 = vpack.c.bf16 %v717_v20, %v716_v19 }
  0x7a   :  { %1233 = vmatprep.subr.bf16.mxu0 %v1385_v13 }
  0x7d   :  { %1235 = vmatpush1.bf16.msra.mxu0 %v1234_v28  ;;  %v719_v28 = vld [vmem:[%s2014_s3 + $0x138] sm:$0xff] }
  0x7e   :  { %1236 = vmatprep.subr.bf16.mxu0 %v1385_v13  ;;  %v1203_v36 = vpack.c.bf16 %v719_v28, %v718_v27 }
  0x81   :  { %1238 = vmatpush1.bf16.msra.mxu0 %v1237_v31  ;;  %v737_v31 = vld [vmem:[%s2014_s3 + $0x1c8] sm:$0xff] }
  0x82   :  { %1239 = vmatprep.subr.bf16.mxu0 %v1385_v13  ;;  %v1205_v38 = vpack.c.bf16 %v737_v31, %v736_v30 }
  0x85   :  { %1241 = vmatpush1.bf16.msra.mxu0 %v1240_v34 }
  0x86   :  { %1242 = vmatprep.subr.bf16.mxu0 %v1385_v13 }
  0x89   :  { %1244 = vmatpush1.bf16.msra.mxu0 %v1243_v37 }
  0x8a   :  { %1245 = vmatprep.subr.bf16.mxu0 %v1385_v13 }
  0x8d   :  { %1247 = vmatpush1.bf16.msra.mxu0 %v1246_v40  ;;  %v721_v40 = vld [vmem:[%s2014_s3 + $0x148] sm:$0xff] }
  0x8e   :  { %1248 = vmatprep.subr.bf16.mxu0 %v1385_v13 }
  0x91   :  { %1250 = vmatpush1.bf16.msra.mxu0 %v1249_v43  ;;  %v1207_v43 = vpack.c.bf16 %v721_v40, %v720_v39 }
  0x92   :  { %1251 = vmatprep.subr.bf16.mxu0 %v1385_v13 }
  0x95   :  { %1253 = vmatpush1.bf16.msra.mxu0 %v1252_v47  ;;  %v723_v47 = vld [vmem:[%s2014_s3 + $0x158] sm:$0xff] }
  0x96   :  { %1254 = vmatprep.subr.bf16.mxu0 %v1385_v13 }
  0x99   :  { %1256 = vmatpush1.bf16.msra.mxu0 %v1255_v50  ;;  %v1211_v50 = vpack.c.bf16 %v723_v47, %v722_v45 }
  0x9a   :  { %1257 = vmatprep.subr.bf16.mxu0 %v1385_v13 }
  0x9d   :  { %1259 = vmatpush1.bf16.msra.mxu0 %v1258_v53  ;;  %v725_v53 = vld [vmem:[%s2014_s3 + $0x168] sm:$0xff] }
  0x9e   :  { %1260 = vmatprep.subr.bf16.mxu0 %v1385_v13  ;;  %v732_v13 = vld [vmem:[%s2014_s3 + $0x1a0] sm:$0xff] }
  0x9f   :  { %v1197_v18 = vpack.c.bf16 %v733_v14, %v732_v13 }
  0xa1   :  { %1262 = vmatpush1.bf16.msra.mxu0 %v1261_v57  ;;  %v1215_v57 = vpack.c.bf16 %v725_v53, %v724_v52 }
 0x109   :  { %v584_v3 = vpop.f32.mrb[0].mxu0 }
 0x10a   :  { %v585_v6 = vadd.f32 %v584_v3, %v107_v63  ;;  %v586_v7 = vpop.f32.mrb[1].mxu0  ;;  %v1219_v63 = vpack.c.bf16 %v727_v62, %v726_v60  ;;  %v127_v3 = vrot.slane %v1885_v61, %v126_v1 }
 0x10b   :  { %v587_v8 = vadd.f32 %v586_v7, %v111_v0  ;;  %v588_v9 = vpop.f32.mrb[2].mxu0  ;;  %v122_v0 = vsub.s32 4, %v1879_v59 }
 0x10c   :  { %673 = vst [vmem:[%s2016_s6] sm:$0xff] %v585_v6  ;;  %v589_v10 = vpop.f32.mrb[3].mxu0  ;;  %v625_v29 = vpop.f32.mrb[0].mxu1 }
 0x10d   :  { %674 = vst [vmem:[%s2016_s6 + $0x8] sm:$0xff] %v587_v8  ;;  %846 = vmatprep.mubr.f32.mxu1 %v587_v8  ;;  %v626_v32 = vadd.f32 %v625_v29, %v115_v23  ;;  %v627_v33 = vpop.f32.mrb[1].mxu1  ;;  %v123_v2 = vrot.slane %v1885_v61, %v122_v0  ;;  %v1085_v10 = vld [vmem:[%s2017_s4] ss:$0 sm:$0xff] }
 0x10e   :  { %847 = vmatmul.mubr.f32.vlgmr.msra.gmra.mrb[4].mxu1 %v585_v6  ;;  %v628_v34 = vadd.f32 %v627_v33, %v119_v24  ;;  %v629_v35 = vpop.f32.mrb[2].mxu1 }
 0x10f   :  { %1192 = vmatpush3.bf16.msra.mxu1 %v1191_v46  ;;  %675 = vst [vmem:[%s2016_s6 + $0x10] sm:$0xff] %v626_v32  ;;  %v630_v37 = vpop.f32.mrb[3].mxu1 }
 0x110   :  { %1194 = vmatprep.subr.bf16.mxu1 %v1193_v56  ;;  %676 = vst [vmem:[%s2016_s6 + $0x18] sm:$0xff] %v628_v34  ;;  %916 = vmatprep.mubr.f32.mxu1 %v628_v34 }
 0x113   :  { %1196 = vmatpush3.bf16.msra.mxu1 %v1195_v17 }
 0x114   :  { %1198 = vmatprep.subr.bf16.mxu1 %v1197_v18 }
 0x117   :  { %1200 = vmatpush3.bf16.msra.mxu1 %v1199_v25 }
 0x118   :  { %1202 = vmatprep.subr.bf16.mxu1 %v1201_v26 }
 0x11b   :  { %1204 = vmatpush3.bf16.msra.mxu1 %v1203_v36 }
 0x11c   :  { %1206 = vmatprep.subr.bf16.mxu1 %v1205_v38 }
 0x11f   :  { %1208 = vmatpush3.bf16.msra.mxu1 %v1207_v43 }
 0x120   :  { %1210 = vmatprep.subr.bf16.mxu1 %v1209_v44 }
 0x123   :  { %1212 = vmatpush3.bf16.msra.mxu1 %v1211_v50 }
 0x124   :  { %1214 = vmatprep.subr.bf16.mxu1 %v1213_v51 }
 0x127   :  { %1216 = vmatpush3.bf16.msra.mxu1 %v1215_v57 }
 0x128   :  { %1218 = vmatprep.subr.bf16.mxu1 %v1217_v58 }
 0x12b   :  { %1220 = vmatpush3.bf16.msra.mxu1 %v1219_v63 }
 0x12e   :  { %917 = vmatmul.mubr.f32.vlgmr.msra.gmra.mrb[6].mxu1 %v626_v32 }
 0x13d   :  { %v666_v4 = vpop.f32.mrb[4].mxu0 }
 0x13e   :  { %v667_v5 = vadd.f32 %v666_v4, %v123_v2  ;;  %v668_v6 = vpop.f32.mrb[5].mxu0 }
 0x13f   :  { %v669_v7 = vadd.f32 %v668_v6, %v127_v3  ;;  %v670_v8 = vpop.f32.mrb[6].mxu0 }
 0x140   :  { %677 = vst [vmem:[%s2016_s6 + $0x20] sm:$0xff] %v667_v5  ;;  %v671_v9 = vpop.f32.mrb[7].mxu0 }
 0x141   :  { %679 = vst.msk [vmem:[%s2016_s6 + $0x28] sm:$0xff] %vm678_vm3, %v669_v7  ;;  %1086 = vmatprep.mubr.msk.f32.mxu0 %vm678_vm3, %v669_v7 }
 0x142   :  { %987 = vmatmul.mubr.f32.vlgmr.msra.gmra.mrb[8].mxu0 %v667_v5 }
 0x1e1   :  { %v1119_v59 = vpop.f32.mrb[4].mxu1 }
 0x1e2   :  { %v1120_v46 = vpop.f32.mrb[5].mxu1 }
 0x1e3   :  { %v1121_v61 = vadd.f32 %v1120_v46, %v1119_v59 }
 0x1e5   :  { %v849_v12 = vadd.f32 %v1121_v61, %v1085_v10 }
 0x201   :  { %v1154_v56 = vpop.f32.mrb[6].mxu1 }
 0x202   :  { %v1155_v11 = vpop.f32.mrb[7].mxu1 }
 0x203   :  { %v1156_v13 = vadd.f32 %v1155_v11, %v1154_v56 }
 0x205   :  { %v919_v14 = vadd.f32 %v1156_v13, %v849_v12 }
 0x215   :  { %v988_v15 = vpop.f32.mrb[8].mxu0 }
 0x216   :  { %v989_v16 = vadd.f32 %v988_v15, %v919_v14  ;;  %v990_v17 = vpop.f32.mrb[9].mxu0 }
 0x218   :  { %993 = vst.msk [vmem:[%s2018_s5] sm:$0xff] %vm992_vm4, %v989_v16 }

</bundles_post_ra>
